<compile_context>
chip_gen: v7x
topology: tpu7x:2x2x1
jax: 0.10.0
libtpu: 0.0.40
codegen_flags: <defaults>
</compile_context>

<pallas_src>
import jax
import jax.numpy as jnp
from jax.experimental import pallas as pl
from jax.experimental.pallas import tpu as pltpu

EPS = 1e-12  # matches torch.nn.functional.normalize default eps


def relcos_kernel(x_ref, a_ref, o_ref):
    # x_ref: (Nt, I, Kt)  input tile, K (lanes) last
    # a_ref: (M,  I, Kt)  anchor tile (already L2-normalized over I)
    # o_ref: (Nt, M, Kt)  output tile
    M = a_ref.shape[0]
    I = x_ref.shape[1]

    # TODO(synk): for bf16 inputs on v6e/v7x keep the multiplies in bf16 and only
    # accumulate in f32; v5e has no bf16 VALU, so the f32 path below is kept.
    x = x_ref[...].astype(jnp.float32)                        # (Nt, I, Kt)

    # F.normalize(x, p=2, dim=1):  1 / max(||x||, eps)  ==  rsqrt(max(sumsq, eps^2)).
    # Single EUP op instead of sqrt + divide.
    sumsq = jnp.sum(x * x, axis=1, keepdims=True)             # (Nt, 1, Kt)
    inv = jax.lax.rsqrt(jnp.maximum(sumsq, EPS * EPS))        # (Nt, 1, Kt)

    # Defer the normalization scale past the contraction when that is cheaper
    # (M multiplies per (n, k) instead of I). Exact reordering -> same result.
    defer_scale = M < I
    if not defer_scale:
        x = x * inv

    # Contraction over I, one anchor at a time (M is small and static -> unrolled).
    # Never builds the (Nt, M, I, Kt) temp, so no vreg spill / VMEM blowup.
    for m in range(M):
        a_m = a_ref[m].astype(jnp.float32)                    # (I, Kt)
        raw = jnp.sum(x * a_m[None, :, :], axis=1)            # (Nt, Kt)
        if defer_scale:
            raw = raw * inv[:, 0, :]
        o_ref[:, m:m + 1, :] = raw[:, None, :].astype(o_ref.dtype)


def _vmem_limit_bytes():
    """Per-generation scoped-VMEM ceiling (v5e/v6e: 128 MiB phys, v7x: 64 MiB)."""
    try:
        cap = pltpu.get_tpu_info().vmem_capacity_bytes
    except Exception:
        cap = 64 << 20                       # conservative fallback (v7x physical)
    return min(cap // 2, 64 << 20)           # 64 MiB on v5e/v6e, 32 MiB on v7x


def _choose_k_tile(N, I, M, K, itemsize, vmem_budget):
    """Largest lane-aligned K tile that divides K and fits the VMEM budget."""
    if K % 128 != 0:
        return K                             # full-K block is the only legal option
    # Bytes per unit of K per grid step: double-buffered in/out tiles + f32 temps.
    per_k = 2 * (N * I + M * I + N * M) * itemsize + 4 * (2 * N * I + 2 * N)
    kt = min(K, max(128, (vmem_budget // per_k) // 128 * 128))
    while K % kt != 0:                       # keep kt a divisor of K (128 always is)
        kt -= 128
    return kt


def relcos_forward(x, anchors_normalized, n_anchors):
    """x: (N, I, K); anchors_normalized: (M_total, I, K); returns (N, n_anchors, K).

    n_anchors must be a static Python int (it determines the output shape).
    NOTE: for production K < 128 the kernel is lane-starved; prefer batching K
    to >= 128 per call (the demo below just exercises correctness).
    """
    a = anchors_normalized[:n_anchors]                        # static slice (glue)
    N, I, K = x.shape
    M = a.shape[0]
    itemsize = x.dtype.itemsize

    vmem_limit = _vmem_limit_bytes()
    kt = _choose_k_tile(N, I, M, K, itemsize, vmem_limit // 2)
    k_steps = K // kt

    # v7x has 2 TensorCores: make sure there are >= 2 parallel grid steps by also
    # tiling N when a single K tile covers the whole problem.
    n_steps = 2 if (k_steps < 2 and N >= 2 and N % 2 == 0) else 1
    nt = N // n_steps

    cost = pl.CostEstimate(
        flops=2 * N * I * K + 2 * N * M * I * K + N * M * K,
        transcendentals=N * K,                                # one rsqrt per (n, k)
        bytes_accessed=itemsize * (N * I * K + M * I * K + N * M * K),
    )

    # Grid order (k, n): n varies fastest; the anchor block index depends only on
    # k, so anchors stay resident across the inner n steps (fetched once per k).
    out = pl.pallas_call(
        relcos_kernel,
        out_shape=jax.ShapeDtypeStruct((N, M, K), x.dtype),
        grid=(k_steps, n_steps),
        in_specs=[
            pl.BlockSpec((nt, I, kt), lambda k, n: (n, 0, k)),
            pl.BlockSpec((M, I, kt), lambda k, n: (0, 0, k)),
        ],
        out_specs=pl.BlockSpec((nt, M, kt), lambda k, n: (n, 0, k)),
        compiler_params=pltpu.CompilerParams(
            dimension_semantics=("parallel", "parallel"),
            vmem_limit_bytes=vmem_limit,
        ),
        cost_estimate=cost,
    )(x, a)

    return out                                                # (N, M, K)


def reference_relcos(x, anchors_normalized, n_anchors):
    a = anchors_normalized[:n_anchors]
    norm = jnp.sqrt(jnp.sum(x * x, axis=1, keepdims=True))
    xn = x / jnp.maximum(norm, EPS)
    return jnp.einsum('nik,mik->nmk', xn, a)


if __name__ == "__main__":
    # Small shapes consistent with the module: N batch, I in_features, K samples, M anchors.
    N, I, K = 2, 32, 16
    M_TOTAL, N_ANCHORS = 6, 4

    key = jax.random.PRNGKey(0)
    kx, ka = jax.random.split(key)
    x = jax.random.normal(kx, (N, I, K), dtype=jnp.float32)
    anchors_raw = jax.random.normal(ka, (M_TOTAL, I, K), dtype=jnp.float32)

    # Parameter init: anchors = F.normalize(anchors, p=2, dim=1)  (plain-JAX glue).
    a_norm = jnp.sqrt(jnp.sum(anchors_raw * anchors_raw, axis=1, keepdims=True))
    anchors = anchors_raw / jnp.maximum(a_norm, EPS)

    out = relcos_forward(x, anchors, N_ANCHORS)
    out = jax.block_until_ready(out)

    ref = reference_relcos(x, anchors, N_ANCHORS)
    assert out.shape == (N, N_ANCHORS, K), out.shape
    assert jnp.allclose(out, ref, rtol=1e-5, atol=1e-5), "mismatch vs reference"

    print("KERNEL_OK")
</pallas_src>

<mosaic_0001>
module attributes {stable_mosaic.version = 11 : i64} {
  func.func @relcos_kernel(%arg0: i32, %arg1: i32, %arg2: memref<1x32x16xf32, #tpu.memory_space<vmem>>, %arg3: memref<4x32x16xf32, #tpu.memory_space<vmem>>, %arg4: memref<1x4x16xf32, #tpu.memory_space<vmem>>) attributes {dimension_semantics = [#tpu.dimension_semantics<parallel>, #tpu.dimension_semantics<parallel>], iteration_bounds = array<i64: 1, 2>, scalar_prefetch = 0 : i64, scratch_operands = 0 : i64, tpu.core_type = #tpu.core_type<tc>, window_params = [{transform_indices = @transform_0, window_bounds = array<i64: 1, 32, 16>}, {transform_indices = @transform_1, window_bounds = array<i64: 4, 32, 16>}, {transform_indices = @transform_2, window_bounds = array<i64: 1, 4, 16>}]} {
    %c0 = arith.constant 0 : index
    %c0_0 = arith.constant 0 : index
    %c0_1 = arith.constant 0 : index
    %0 = vector.load %arg2[%c0, %c0_0, %c0_1] : memref<1x32x16xf32, #tpu.memory_space<vmem>>, vector<1x32x16xf32>
    %1 = arith.mulf %0, %0 : vector<1x32x16xf32>
    %cst = arith.constant dense<0.000000e+00> : vector<1x16xf32>
    %2 = vector.multi_reduction <add>, %1, %cst [1] : vector<1x32x16xf32> to vector<1x16xf32>
    %3 = vector.shape_cast %2 : vector<1x16xf32> to vector<1x1x16xf32>
    %cst_2 = arith.constant 1.000000e-24 : f32
    %4 = vector.broadcast %cst_2 : f32 to vector<1x1x16xf32>
    %5 = arith.maximumf %3, %4 : vector<1x1x16xf32>
    %6 = math.rsqrt %5 : vector<1x1x16xf32>
    %c0_3 = arith.constant 0 : index
    %c0_4 = arith.constant 0 : index
    %c0_5 = arith.constant 0 : index
    %7 = vector.load %arg3[%c0_3, %c0_4, %c0_5] : memref<4x32x16xf32, #tpu.memory_space<vmem>>, vector<1x32x16xf32>
    %8 = vector.shape_cast %7 : vector<1x32x16xf32> to vector<32x16xf32>
    %9 = vector.shape_cast %8 : vector<32x16xf32> to vector<1x32x16xf32>
    %10 = arith.mulf %0, %9 : vector<1x32x16xf32>
    %cst_6 = arith.constant dense<0.000000e+00> : vector<1x16xf32>
    %11 = vector.multi_reduction <add>, %10, %cst_6 [1] : vector<1x32x16xf32> to vector<1x16xf32>
    %12 = vector.shape_cast %6 : vector<1x1x16xf32> to vector<1x16xf32>
    %13 = arith.mulf %11, %12 : vector<1x16xf32>
    %14 = vector.shape_cast %13 : vector<1x16xf32> to vector<1x1x16xf32>
    %c0_7 = arith.constant 0 : index
    %c0_8 = arith.constant 0 : index
    %c0_9 = arith.constant 0 : index
    %15 = vector.load %arg4[%c0_7, %c0_8, %c0_9] : memref<1x4x16xf32, #tpu.memory_space<vmem>>, vector<1x1x16xf32>
    tpu.vector_store %arg4[%c0_7, %c0_8, %c0_9], %14 {strides = array<i32>} : memref<1x4x16xf32, #tpu.memory_space<vmem>>, vector<1x1x16xf32>,
    %c1 = arith.constant 1 : index
    %c0_10 = arith.constant 0 : index
    %c0_11 = arith.constant 0 : index
    %16 = vector.load %arg3[%c1, %c0_10, %c0_11] : memref<4x32x16xf32, #tpu.memory_space<vmem>>, vector<1x32x16xf32>
    %17 = vector.shape_cast %16 : vector<1x32x16xf32> to vector<32x16xf32>
    %18 = vector.shape_cast %17 : vector<32x16xf32> to vector<1x32x16xf32>
    %19 = arith.mulf %0, %18 : vector<1x32x16xf32>
    %cst_12 = arith.constant dense<0.000000e+00> : vector<1x16xf32>
    %20 = vector.multi_reduction <add>, %19, %cst_12 [1] : vector<1x32x16xf32> to vector<1x16xf32>
    %21 = vector.shape_cast %6 : vector<1x1x16xf32> to vector<1x16xf32>
    %22 = arith.mulf %20, %21 : vector<1x16xf32>
    %23 = vector.shape_cast %22 : vector<1x16xf32> to vector<1x1x16xf32>
    %c0_13 = arith.constant 0 : index
    %c1_14 = arith.constant 1 : index
    %c0_15 = arith.constant 0 : index
    %24 = vector.load %arg4[%c0_13, %c1_14, %c0_15] : memref<1x4x16xf32, #tpu.memory_space<vmem>>, vector<1x1x16xf32>
    tpu.vector_store %arg4[%c0_13, %c1_14, %c0_15], %23 {strides = array<i32>} : memref<1x4x16xf32, #tpu.memory_space<vmem>>, vector<1x1x16xf32>,
    %c2 = arith.constant 2 : index
    %c0_16 = arith.constant 0 : index
    %c0_17 = arith.constant 0 : index
    %25 = vector.load %arg3[%c2, %c0_16, %c0_17] : memref<4x32x16xf32, #tpu.memory_space<vmem>>, vector<1x32x16xf32>
    %26 = vector.shape_cast %25 : vector<1x32x16xf32> to vector<32x16xf32>
    %27 = vector.shape_cast %26 : vector<32x16xf32> to vector<1x32x16xf32>
    %28 = arith.mulf %0, %27 : vector<1x32x16xf32>
    %cst_18 = arith.constant dense<0.000000e+00> : vector<1x16xf32>
    %29 = vector.multi_reduction <add>, %28, %cst_18 [1] : vector<1x32x16xf32> to vector<1x16xf32>
    %30 = vector.shape_cast %6 : vector<1x1x16xf32> to vector<1x16xf32>
    %31 = arith.mulf %29, %30 : vector<1x16xf32>
    %32 = vector.shape_cast %31 : vector<1x16xf32> to vector<1x1x16xf32>
    %c0_19 = arith.constant 0 : index
    %c2_20 = arith.constant 2 : index
    %c0_21 = arith.constant 0 : index
    %33 = vector.load %arg4[%c0_19, %c2_20, %c0_21] : memref<1x4x16xf32, #tpu.memory_space<vmem>>, vector<1x1x16xf32>
    tpu.vector_store %arg4[%c0_19, %c2_20, %c0_21], %32 {strides = array<i32>} : memref<1x4x16xf32, #tpu.memory_space<vmem>>, vector<1x1x16xf32>,
    %c3 = arith.constant 3 : index
    %c0_22 = arith.constant 0 : index
    %c0_23 = arith.constant 0 : index
    %34 = vector.load %arg3[%c3, %c0_22, %c0_23] : memref<4x32x16xf32, #tpu.memory_space<vmem>>, vector<1x32x16xf32>
    %35 = vector.shape_cast %34 : vector<1x32x16xf32> to vector<32x16xf32>
    %36 = vector.shape_cast %35 : vector<32x16xf32> to vector<1x32x16xf32>
    %37 = arith.mulf %0, %36 : vector<1x32x16xf32>
    %cst_24 = arith.constant dense<0.000000e+00> : vector<1x16xf32>
    %38 = vector.multi_reduction <add>, %37, %cst_24 [1] : vector<1x32x16xf32> to vector<1x16xf32>
    %39 = vector.shape_cast %6 : vector<1x1x16xf32> to vector<1x16xf32>
    %40 = arith.mulf %38, %39 : vector<1x16xf32>
    %41 = vector.shape_cast %40 : vector<1x16xf32> to vector<1x1x16xf32>
    %c0_25 = arith.constant 0 : index
    %c3_26 = arith.constant 3 : index
    %c0_27 = arith.constant 0 : index
    %42 = vector.load %arg4[%c0_25, %c3_26, %c0_27] : memref<1x4x16xf32, #tpu.memory_space<vmem>>, vector<1x1x16xf32>
    tpu.vector_store %arg4[%c0_25, %c3_26, %c0_27], %41 {strides = array<i32>} : memref<1x4x16xf32, #tpu.memory_space<vmem>>, vector<1x1x16xf32>,
    return
  }
  func.func @transform_0(%arg0: i32, %arg1: i32) -> (i32, i32, i32) {
    %c0_i32 = arith.constant 0 : i32
    %c0_i32_0 = arith.constant 0 : i32
    return %arg1, %c0_i32, %arg0 : i32, i32, i32
  }
  func.func @transform_1(%arg0: i32, %arg1: i32) -> (i32, i32, i32) {
    %c0_i32 = arith.constant 0 : i32
    %c0_i32_0 = arith.constant 0 : i32
    %c0_i32_1 = arith.constant 0 : i32
    return %c0_i32, %c0_i32_0, %arg0 : i32, i32, i32
  }
  func.func @transform_2(%arg0: i32, %arg1: i32) -> (i32, i32, i32) {
    %c0_i32 = arith.constant 0 : i32
    %c0_i32_0 = arith.constant 0 : i32
    return %arg1, %c0_i32, %arg0 : i32, i32, i32
  }
}

</mosaic_0001>

<bundles_post_ra>
// kernel: tpu_custom_call.1
= control target key start
LH: loop header
LB: loop body
LE: loop exit
PB: predicated region body
PF: predicated region fallthrough
CT: control target
= control target key end

     0   :  { %7 = vsyncpa [#allocation3], 0  ;;  %s771_s0 = inlined_call_operand.vmem [shape: f32[2,32,16], index: 0, kind: input, shape index: {}]   ;;  %s772_s1 = inlined_call_operand.vmem [shape: f32[4,32,16], index: 1, kind: input, shape index: {}]   ;;  %s773_s2 = inlined_call_operand.hbm [shape: f32[2,4,16], index: 2, kind: output, shape index: {}]  }
   0x1   :  { %9 = vsyncpa [#allocation3 + $0x1], 0  ;;  %s587_s9 = smov 0   ;;  %s589_s10 = smov 0  }
   0x2   :  { %s591_s11 = smov 0   ;;  %s593_s12 = smov 0  }
   0x3   :  { %s595_s13 = smov 0   ;;  %s597_s14 = smov 0  }
   0x4 LB: > { %s408_s15 = sadd.s32 4294967295, %s569_s14   ;;  %s409_s16 = sadd.s32 4294967294, %s569_s14   ;;  %s569_s14 = sphi %s597_s14, %s15_s14   ;;  %s565_s13 = sphi %s595_s13, %s780_s13   ;;  %s561_s12 = sphi %s593_s12, %s779_s12   ;;  %s557_s11 = sphi %s591_s11, %s778_s11   ;;  %s553_s10 = sphi %s589_s10, %s777_s10   ;;  %s549_s9 = sphi %s587_s9, %s776_s9  }
   0x5   : > { %s24_s17 = sadd.s32 1, %s565_s13  ;;  %s90_s18 = sadd.s32 1, %s557_s11 }
   0x6   : > { %p25_p0 = scmp.ge.s32.totalorder %s24_s17, 2  ;;  %p100_p1 = scmp.ne.s32.totalorder %s557_s11, %s553_s10 }
   0x7   : > { %p101_p2 = scmp.eq.s32.totalorder %s408_s15, 1  ;;  %p106_p3 = scmp.ne.s32.totalorder %s553_s10, %s549_s9 }
   0x8   : > { %s782_s17 = smov (%p25_p0, %s24_s17), 0  ;;  %p107_p5 = scmp.eq.s32.totalorder %s409_s16, 1 }
   0x9   : > { %p627_p4 = por %p101_p2, %p100_p1  ;;  %s85_s20 = ssub.s32 %s565_s13, %s782_s17 }
   0xa   : > { %p413_p6 = scmp.ge.s32.totalorder %s569_s14, 1  ;;  %p88_p7 = scmp.eq.s32.totalorder %s85_s20, 0 }
   0xb   : > { %p634_p8 = por %p107_p5, %p106_p3  ;;  %p143_p9 = scmp.lt.s32.totalorder %s569_s14, 3 }
   0xc   : > { %s640_s22 = scalar_select %p88_p7, %s557_s11, %s90_s18  }
   0xd   : > { %p144_p10 = pnand %p413_p6, %p143_p9 }
   0xe   : > { %p172_p11 = scmp.lt.s32.totalorder (!%p144_p10), %s561_s12, 1  ;;  %v208_v0 = vld [vmem:[%s772_s1] sm:$0xff] (!%p144_p10)  ;;  %v209_v1 = vld [vmem:[%s772_s1 + $0x8] sm:$0xff] (!%p144_p10)  ;;  %v210_v2 = vld [vmem:[%s772_s1 + $0x10] sm:$0xff] (!%p144_p10)  ;;  %vm192_vm0 = vcmask (!%p144_p10), 130048   ;;  %s430_s26 = sshll.u32 (!%p144_p10), %s561_s12, 6 }
   0xf   : > { %147 = sbr.rel (%p144_p10) target bundleno = 78 (0x4e), region = 28  ;;  %v211_v3 = vld [vmem:[%s772_s1 + $0x18] sm:$0xff] (!%p144_p10)  ;;  %v417_v16 = vld [vmem:[%s772_s1 + $0x20] sm:$0xff] (!%p144_p10)  ;;  %v418_v17 = vld [vmem:[%s772_s1 + $0x28] sm:$0xff] (!%p144_p10)  ;;  %vm230_vm1 = vcmask (!%p144_p10), 122880   ;;  %s722_s3 = scalar_lea.hbm (!%p144_p10), %s773_s2, %s430_s26 }
  0x10   : > { %v419_v18 = vld [vmem:[%s772_s1 + $0x30] sm:$0xff] (!%p144_p10)  ;;  %v420_v23 = vld [vmem:[%s772_s1 + $0x38] sm:$0xff] (!%p144_p10)  ;;  %v421_v24 = vld [vmem:[%s772_s1 + $0x40] sm:$0xff] (!%p144_p10)  ;;  %s571_s5 = smov (!%p144_p10), [#allocation2]  }
  0x11   : > { %v422_v29 = vld [vmem:[%s772_s1 + $0x48] sm:$0xff] (!%p144_p10)  ;;  %v423_v37 = vld [vmem:[%s772_s1 + $0x50] sm:$0xff] (!%p144_p10)  ;;  %v424_v38 = vld [vmem:[%s772_s1 + $0x58] sm:$0xff] (!%p144_p10)  ;;  %s495_s6 = sshll.u32 (!%p144_p10), %s571_s5, 4  ;;  %s496_s6 = int_to_ptr.vmem [resolvable:$false] %s495_s6 }
  0x12   : > { %v425_v44 = vld [vmem:[%s772_s1 + $0x60] sm:$0xff] (!%p144_p10)  ;;  %v426_v53 = vld [vmem:[%s772_s1 + $0x68] sm:$0xff] (!%p144_p10)  ;;  %v427_v54 = vld [vmem:[%s772_s1 + $0x70] sm:$0xff] (!%p144_p10)  ;;  %s497_s7 = scalar_lea.vmem (!%p144_p10), %s496_s6, 128 }
  0x13   : > { %v428_v58 = vld [vmem:[%s772_s1 + $0x78] sm:$0xff] (!%p144_p10) }
  0x16   : > { %s173_s23 = scalar_select %p172_p11, %s561_s12, 1 }
  0x18   : > { %s433_s24 = sshll.u32 %s173_s23, 5 }
  0x19   : > { %s179_s29 = scalar_lea.vmem %s771_s0, %s433_s24  ;;  %s169_s24 = sand.u32 1, %s553_s10  }
  0x1a   : > { %v184_v4 = vld [vmem:[%s179_s29] sm:$0xff]  ;;  %v185_v5 = vld [vmem:[%s179_s29 + $0x8] sm:$0xff]  ;;  %v186_v6 = vld [vmem:[%s179_s29 + $0x10] sm:$0xff]  ;;  %s414_s25 = sshll.u32 %s169_s24, 2  ;;  %s305_s12 = scalar_lea.sflag [#allocation3], %s169_s24 }
  0x1b   : > { %v187_v7 = vld [vmem:[%s179_s29 + $0x18] sm:$0xff]  ;;  %v188_v8 = vmul.f32 %v184_v4, %v184_v4  ;;  %v189_v9 = vmul.f32 %v185_v5, %v185_v5  ;;  %v190_v10 = vmul.f32 %v186_v6, %v186_v6  ;;  %v212_v11 = vmul.f32 %v208_v0, %v184_v4  ;;  %s171_s27 = scalar_lea.vmem [#allocation2], %s414_s25 }
  0x1c   : > { %v191_v12 = vmul.f32 %v187_v7, %v187_v7  ;;  %v213_v13 = vmul.f32 %v209_v1, %v185_v5  ;;  %v214_v14 = vmul.f32 %v210_v2, %v186_v6  ;;  %v215_v15 = vmul.f32 %v211_v3, %v187_v7  ;;  %s319_s28 = sshll.u32 %s171_s27, 4  ;;  %s724_s28 = int_to_ptr.vmem [resolvable:$true] %s319_s28 }
  0x1d   : > { %v193_v19 = vsel %vm192_vm0, %v188_v8, 0.0  ;;  %v194_v20 = vsel %vm192_vm0, %v189_v9, 0.0  ;;  %v196_v21 = vsel %vm192_vm0, %v190_v10, 0.0  ;;  %v216_v22 = vsel %vm192_vm0, %v212_v11, 0.0  ;;  %s491_s4 = scalar_lea.vmem %s724_s28, 64  ;;  %p498_p1 = scmp.lt.s32.totalorder %s724_s28, %s496_s6 }
  0x1e   : > { %v195_v25 = vadd.f32 %v194_v20, %v193_v19  ;;  %v198_v26 = vsel %vm192_vm0, %v191_v12, 0.0  ;;  %v217_v27 = vsel %vm192_vm0, %v213_v13, 0.0  ;;  %v219_v28 = vsel %vm192_vm0, %v214_v14, 0.0  ;;  %p492_p12 = scmp.ne.s32.totalorder %s724_s28, %s491_s4  ;;  %p499_p2 = scmp.lt.s32.totalorder %s497_s7, %s491_s4 }
  0x1f   : > { %v218_v30 = vadd.f32 %v217_v27, %v216_v22  ;;  %v221_v31 = vsel %vm192_vm0, %v215_v15, 0.0  ;;  %v237_v32 = vmul.f32 %v417_v16, %v184_v4  ;;  %v238_v33 = vmul.f32 %v418_v17, %v185_v5 }
  0x20   : > { %v197_v34 = vadd.f32 %v196_v21, %v195_v25  ;;  %v239_v35 = vmul.f32 %v419_v18, %v186_v6  ;;  %v240_v36 = vmul.f32 %v420_v23, %v187_v7  ;;  %v261_v39 = vmul.f32 %v421_v24, %v184_v4  ;;  %p493_p13 = pnand %p492_p12, %p627_p4  ;;  %p500_p3 = por %p499_p2, %p498_p1 }
  0x21   : > { %v220_v40 = vadd.f32 %v219_v28, %v218_v30  ;;  %v241_v41 = vsel %vm192_vm0, %v237_v32, 0.0  ;;  %v242_v42 = vsel %vm192_vm0, %v238_v33, 0.0  ;;  %v262_v43 = vmul.f32 %v422_v29, %v185_v5 }
  0x22   : > { %v199_v45 = vadd.f32 %v198_v26, %v197_v34  ;;  %v243_v46 = vadd.f32 %v242_v42, %v241_v41  ;;  %v244_v47 = vsel %vm192_vm0, %v239_v35, 0.0  ;;  %v246_v48 = vsel %vm192_vm0, %v240_v36, 0.0  ;;  %p494_p0 = pneg %p493_p13 }
  0x23   : > { %v222_v49 = vadd.f32 %v221_v31, %v220_v40  ;;  %v263_v50 = vmul.f32 %v423_v37, %v186_v6  ;;  %v264_v51 = vmul.f32 %v424_v38, %v187_v7  ;;  %v265_v52 = vsel %vm192_vm0, %v261_v39, 0.0 }
  0x24   : > { %v200_v55 = vrot.slane %v199_v45, 4  ;;  %v245_v56 = vadd.f32 %v244_v47, %v243_v46  ;;  %v266_v57 = vsel %vm192_vm0, %v262_v43, 0.0  ;;  %v285_v59 = vmul.f32 %v425_v44, %v184_v4  ;;  %p501_p5 = pnand %p500_p3, %p494_p0 }
  0x25   : > { %v223_v60 = vrot.slane %v222_v49, 4  ;;  %v267_v61 = vadd.f32 %v266_v57, %v265_v52  ;;  %v268_v62 = vsel %vm192_vm0, %v263_v50, 0.0  ;;  %v270_v63 = vsel %vm192_vm0, %v264_v51, 0.0 }
  0x26   : > { %v201_v0 = vadd.f32 %v200_v55, %v199_v45  ;;  %v247_v1 = vadd.f32 %v246_v48, %v245_v56  ;;  %v286_v2 = vmul.f32 %v426_v53, %v185_v5  ;;  %v287_v3 = vmul.f32 %v427_v54, %v186_v6 }
  0x27   : > { %v269_v8 = vadd.f32 %v268_v62, %v267_v61  ;;  %v288_v9 = vmul.f32 %v428_v58, %v187_v7  ;;  %v289_v10 = vsel %vm192_vm0, %v285_v59, 0.0  ;;  %v224_v14 = vadd.f32 %v223_v60, %v222_v49 }
  0x28   : > { %v202_v11 = vrot.slane %v201_v0, 2  ;;  %v248_v12 = vrot.slane %v247_v1, 4  ;;  %v290_v13 = vsel %vm192_vm0, %v286_v2, 0.0  ;;  %v292_v4 = vsel %vm192_vm0, %v287_v3, 0.0 }
  0x29   : > { %v271_v15 = vadd.f32 %v270_v63, %v269_v8  ;;  %v291_v16 = vadd.f32 %v290_v13, %v289_v10  ;;  %v294_v19 = vsel %vm192_vm0, %v288_v9, 0.0  ;;  %v225_v7 = vrot.slane %v224_v14, 2 }
  0x2a   : > { %v203_v17 = vadd.f32 %v202_v11, %v201_v0  ;;  %v249_v18 = vadd.f32 %v248_v12, %v247_v1 }
  0x2b   : > { %v272_v5 = vrot.slane %v271_v15, 4  ;;  %v293_v6 = vadd.f32 %v292_v4, %v291_v16  ;;  %v226_v28 = vadd.f32 %v225_v7, %v224_v14 }
  0x2c   : > { %v204_v20 = vrot.slane %v203_v17, 1  ;;  %v250_v21 = vrot.slane %v249_v18, 2 }
  0x2d   : > { %v273_v22 = vadd.f32 %v272_v5, %v271_v15  ;;  %v295_v23 = vadd.f32 %v294_v19, %v293_v6  ;;  %v227_v33 = vrot.slane %v226_v28, 1 }
  0x2e   : > { %v205_v24 = vadd.f32 %v204_v20, %v203_v17  ;;  %v251_v29 = vadd.f32 %v250_v21, %v249_v18 }
  0x2f   : > { %v274_v25 = vrot.slane %v273_v22, 2  ;;  %v296_v26 = vrot.slane %v295_v23, 4  ;;  %v228_v38 = vadd.f32 %v227_v33, %v226_v28 }
  0x30   : > { %v206_v27 = vmax.f32 %v205_v24, 1e-24  ;;  %v252_v34 = vrot.slane %v251_v29, 1 }
  0x31   : > { %v275_v30 = vadd.f32 %v274_v25, %v273_v22  ;;  %v297_v31 = vadd.f32 %v296_v26, %v295_v23 }
  0x32   : > { %489 = vrsqrt.f32 %v206_v27  ;;  %v253_v39 = vadd.f32 %v252_v34, %v251_v29 }
  0x33   : > { %v298_v32 = vrot.slane %v297_v31, 2  ;;  %v276_v35 = vrot.slane %v275_v30, 1 }
  0x35   : > { %v299_v36 = vadd.f32 %v298_v32, %v297_v31  ;;  %v277_v40 = vadd.f32 %v276_v35, %v275_v30 }
  0x37   : > { %v300_v37 = vrot.slane %v299_v36, 1 }
  0x39   : > { %v301_v41 = vadd.f32 %v300_v37, %v299_v36 }
  0x3c   : > { %v490_v42 = vpop.eup %489 }
  0x3d   : > { %v229_v43 = vmul.f32 %v490_v42, %v228_v38  ;;  %v254_v44 = vmul.f32 %v490_v42, %v253_v39  ;;  %v278_v45 = vmul.f32 %v490_v42, %v277_v40  ;;  %v302_v46 = vmul.f32 %v490_v42, %v301_v41 }
  0x3f   : > { %231 = vst.msk [vmem:[%s171_s27] sm:$0x1] %vm230_vm1, %v229_v43  ;;  %255 = vst.msk [vmem:[%s171_s27 + $0x1] sm:$0x1] %vm230_vm1, %v254_v44 }
  0x40   : > { %279 = vst.msk [vmem:[%s171_s27 + $0x2] sm:$0x1] %vm230_vm1, %v278_v45  ;;  %303 = vst.msk [vmem:[%s171_s27 + $0x3] sm:$0x1] %vm230_vm1, %v302_v46 }
  0x41   : > { %504 = shalt.err (!%p501_p5)
}
  0x42   : > { %s505_s8 = scalar_lea.hbm %s722_s3, 64  ;;  %s509_s18 = scalar_lea.hbm %s773_s2, 128 }
  0x43   : > { %p506_p6 = scmp.ne.s32.totalorder %s722_s3, %s505_s8  ;;  %p510_p10 = scmp.lt.u32.totalorder %s722_s3, %s773_s2 }
  0x44   : > { %p511_p11 = scmp.lt.u32.totalorder %s509_s18, %s505_s8  ;;  %p513_p13 = scmp.lt.u32.totalorder %s505_s8, %s722_s3 }
  0x45   : > { %p507_p7 = pnand %p506_p6, %p627_p4 }
  0x46   : > { %p512_p12 = por %p511_p11, %p510_p10 }
  0x47   : > { %p508_p9 = pneg %p507_p7 }
  0x48   : > { %p514_p0 = por %p513_p13, %p512_p12 }
  0x4a   : > { %p515_p1 = pnand %p514_p0, %p508_p9 }
  0x4c   : > { %518 = shalt.err (!%p515_p1)
}
  0x4d   : > { %434 = dma.vmem_to_hbm [thread:$0]  (%p627_p4), %s724_s28, 64, %s722_s3, %s305_s12  }
  0x4e PF: > { %p440_p2 = scmp.ge.s32.totalorder %s569_s14, 2  ;;  %s331_s24 = sand.u32 1, %s549_s9  }
  0x4f   : > { %s332_s25 = scalar_lea.sflag [#allocation3], %s331_s24 }
  0x50   : > { %p437_p3 = pnand %p440_p2, %p634_p8 }
  0x52   : > { %544 = dma.done.wait (!%p437_p3), %s332_s25, 64  }
  0x53   : > { %546 = vsyncadd (!%p437_p3), %s332_s25, 4294967232  ;;  %s15_s14 = sadd.s32 1, %s569_s14   ;;  %s776_s9 = smov %s553_s10 }
  0x54   : > { %p12_p5 = scmp.ge.s32.totalorder %s15_s14, 4   ;;  %s777_s10 = smov %s557_s11 }
  0x55   : > { %s778_s11 = smov %s640_s22  ;;  %s779_s12 = smov %s565_s13 }
  0x56   : > { %s780_s13 = smov %s782_s17  ;;  %14 = sbr.rel (!%p12_p5) target bundleno = 4 (0x4), region = 69 }
  0x5d   :  { %337 = vsyncpa [#allocation3], 1 }
  0x5e   :  { %339 = vsyncpa [#allocation3 + $0x1], 1 }

</bundles_post_ra>
